<compile_context>
chip_gen: v5e
topology: v5e:2x2
jax: 0.10.0
libtpu: 0.0.40
codegen_flags: <defaults>
</compile_context>

<pallas_src>
import functools
import math

import jax
import jax.numpy as jnp
from jax.experimental import pallas as pl
from jax.experimental.pallas import tpu as pltpu


def _round_up(x, m):
    return (x + m - 1) // m * m


def embed_gather_kernel(ids_ref, lut_hbm, o_ref, sem, *, window, scale):
    """One grid step: DMA-gather `tpb` embedding rows, then scale in f32.

    ids_ref : (n_pad,) int32 SMEM     -- all token ids (scalar-prefetched)
    lut_hbm : (n_token, d_model) HBM  -- raw embedding table (memory_space=ANY)
    o_ref   : (tpb, d_model) VMEM     -- output tile; also the DMA destination
    sem     : DMA semaphore shared by every row copy of this grid step
    """
    tpb = o_ref.shape[0]
    base = pl.program_id(0) * tpb

    def issue(t):
        row = ids_ref[base + t]
        pltpu.make_async_copy(
            lut_hbm.at[pl.ds(row, 1), :],
            o_ref.at[pl.ds(t, 1), :],
            sem,
        ).start()

    def wait_one():
        # Reconstructed same-shape descriptor on the same semaphore: waits for
        # one row-copy's worth of completion.  Rows may land in any order;
        # only the total matters because o_ref is not read until all waits
        # have retired.
        pltpu.make_async_copy(
            lut_hbm.at[pl.ds(0, 1), :],
            o_ref.at[pl.ds(0, 1), :],
            sem,
        ).wait()

    # Prime the in-flight window.
    @pl.loop(0, window)
    def _(t):
        issue(t)

    # Steady state: keep ~`window` row DMAs in flight, retire one per step.
    @pl.loop(0, tpb)
    def _(t):
        @pl.when(t + window < tpb)
        def _():
            issue(t + window)

        wait_one()

    # All rows have landed; one vectorised f32 scale pass, then cast back.
    o_ref[...] = (o_ref[...].astype(jnp.float32) * scale).astype(o_ref.dtype)


def embeddings_forward(x, lut, *, tokens_per_block=512, dma_window=16):
    """Pallas equivalent of `Embeddings.forward`: lut[x] * sqrt(d_model)."""
    batch, seq = x.shape
    n_token, d_model = lut.shape
    scale = float(math.sqrt(d_model))
    dtype = lut.dtype

    # Flatten and clip ids.  PyTorch errors on out-of-range ids; clamping to a
    # valid row guarantees no OOB HBM DMA can ever be issued.
    # TODO(synk): surface out-of-range ids to callers instead of clamping.
    ids = jnp.clip(x.reshape(-1).astype(jnp.int32), 0, n_token - 1)
    n = ids.shape[0]

    # Token-block size: multiple of 8 (sublane granule), shrunk for tiny
    # inputs so we never pad far past the real token count.
    tpb = _round_up(min(tokens_per_block, _round_up(n, 8)), 8)
    n_pad = _round_up(n, tpb)
    ids_pad = jnp.zeros((n_pad,), jnp.int32).at[:n].set(ids)  # pad -> row 0

    window = max(1, min(dma_window, tpb))

    # VMEM: only the double-buffered output tile (the table stays in HBM),
    # clamped below this generation's physical VMEM capacity.
    itemsize = jnp.dtype(dtype).itemsize
    need = 2 * tpb * d_model * itemsize + (4 << 20)
    try:
        cap = pltpu.get_tpu_info().vmem_capacity_bytes
    except Exception:
        cap = 64 << 20  # conservative (v7x per-TC VMEM)
    vmem_limit = int(min(max(need, 16 << 20), max(cap - (16 << 20), 16 << 20)))

    grid = (n_pad // tpb,)

    out = pl.pallas_call(
        functools.partial(embed_gather_kernel, window=window, scale=scale),
        out_shape=jax.ShapeDtypeStruct((n_pad, d_model), dtype),
        grid_spec=pltpu.PrefetchScalarGridSpec(
            num_scalar_prefetch=1,                     # ids -> SMEM
            grid=grid,
            in_specs=[
                # Embedding table stays resident in HBM; rows are gathered by
                # manual DMA inside the kernel.
                pl.BlockSpec(memory_space=pl.ANY),
            ],
            out_specs=pl.BlockSpec((tpb, d_model), lambda i, ids: (i, 0)),
            scratch_shapes=[pltpu.SemaphoreType.DMA],
        ),
        compiler_params=pltpu.CompilerParams(
            dimension_semantics=("parallel",),   # independent tiles -> 2 TCs
            vmem_limit_bytes=vmem_limit,
        ),
    )(ids_pad, lut)

    return out[:n].reshape(batch, seq, d_model)


if __name__ == "__main__":
    # Module hyper-params (small, consistent with Embeddings(n_token, d_model)).
    n_token, d_model = 100, 32
    batch, seq = 2, 8

    key = jax.random.PRNGKey(0)
    k_lut, k_ids = jax.random.split(key)

    # nn.Embedding default init is N(0, 1); reproduce deterministically here.
    lut = jax.random.normal(k_lut, (n_token, d_model), dtype=jnp.float32)
    x = jax.random.randint(k_ids, (batch, seq), 0, n_token, dtype=jnp.int32)

    out = embeddings_forward(x, lut)
    out = jax.block_until_ready(out)

    # Reference check (plain JAX).  The kernel copies exact table rows and
    # multiplies by the same f32 scale, so the tolerance can be tight.
    ref = jnp.take(lut, x, axis=0) * math.sqrt(d_model)
    assert out.shape == (batch, seq, d_model)
    assert jnp.allclose(out, ref, atol=1e-5, rtol=1e-5)

    print("KERNEL_OK")
</pallas_src>

<mosaic_0001>
module attributes {stable_mosaic.version = 11 : i64} {
  func.func @embed_gather_kernel(%arg0: i32, %arg1: memref<16xi32, #tpu.memory_space<smem>>, %arg2: memref<100x32xf32, #tpu.memory_space<any>>, %arg3: memref<16x32xf32, #tpu.memory_space<vmem>>, %arg4: memref<!tpu.dma_semaphore, #tpu.memory_space<semaphore_mem>>) attributes {dimension_semantics = [#tpu.dimension_semantics<parallel>], iteration_bounds = array<i64: 1>, scalar_prefetch = 1 : i64, scratch_operands = 1 : i64, tpu.core_type = #tpu.core_type<tc>, window_params = [{}, {transform_indices = @transform_1, window_bounds = array<i64: 16, 32>}]} {
    %c16_i32 = arith.constant 16 : i32
    %0 = arith.muli %arg0, %c16_i32 : i32
    %c0_i32 = arith.constant 0 : i32
    %c16_i32_0 = arith.constant 16 : i32
    %1 = arith.addi %c0_i32, %c16_i32_0 : i32
    %c1_i32 = arith.constant 1 : i32
    scf.for %arg5 = %c0_i32 to %1 step %c1_i32  : i32 {
      %c1_i32_9 = arith.constant 1 : i32
      %7 = arith.muli %arg5, %c1_i32_9 : i32
      %c0_i32_10 = arith.constant 0 : i32
      %8 = arith.addi %c0_i32_10, %7 : i32
      %9 = arith.addi %0, %8 : i32
      %10 = arith.index_cast %9 : i32 to index
      %11 = memref.load %arg1[%10] : memref<16xi32, #tpu.memory_space<smem>>
      %c0_i32_11 = arith.constant 0 : i32
      %12 = tpu.memref_slice %arg2[%11, %c0_i32_11] : memref<100x32xf32, #tpu.memory_space<any>> -> memref<1x32xf32, #tpu.memory_space<any>>
      %c0_i32_12 = arith.constant 0 : i32
      %13 = tpu.memref_slice %arg3[%8, %c0_i32_12] : memref<16x32xf32, #tpu.memory_space<vmem>> -> memref<1x32xf32, #tpu.memory_space<vmem>>
      tpu.enqueue_dma source(%12 : memref<1x32xf32, #tpu.memory_space<any>>) target(%13 : memref<1x32xf32, #tpu.memory_space<vmem>>) target_semaphore(%arg4 : memref<!tpu.dma_semaphore, #tpu.memory_space<semaphore_mem>>)
    }
    %c16_i32_1 = arith.constant 16 : i32
    %c0_i32_2 = arith.constant 0 : i32
    %c16_i32_3 = arith.constant 16 : i32
    %2 = arith.addi %c0_i32_2, %c16_i32_3 : i32
    %c1_i32_4 = arith.constant 1 : i32
    scf.for %arg5 = %c0_i32_2 to %2 step %c1_i32_4  : i32 {
      %c1_i32_9 = arith.constant 1 : i32
      %7 = arith.muli %arg5, %c1_i32_9 : i32
      %c0_i32_10 = arith.constant 0 : i32
      %8 = arith.addi %c0_i32_10, %7 : i32
      %c16_i32_11 = arith.constant 16 : i32
      %9 = arith.addi %8, %c16_i32_11 : i32
      %c16_i32_12 = arith.constant 16 : i32
      %10 = arith.cmpi slt, %9, %c16_i32_12 : i32
      %11 = arith.extui %10 : i1 to i32
      %c0_i32_13 = arith.constant 0 : i32
      %12 = arith.cmpi ne, %11, %c0_i32_13 : i32
      scf.if %12 {
        %c16_i32_18 = arith.constant 16 : i32
        %15 = arith.addi %8, %c16_i32_18 : i32
        %16 = arith.addi %0, %15 : i32
        %17 = arith.index_cast %16 : i32 to index
        %18 = memref.load %arg1[%17] : memref<16xi32, #tpu.memory_space<smem>>
        %c0_i32_19 = arith.constant 0 : i32
        %19 = tpu.memref_slice %arg2[%18, %c0_i32_19] : memref<100x32xf32, #tpu.memory_space<any>> -> memref<1x32xf32, #tpu.memory_space<any>>
        %c0_i32_20 = arith.constant 0 : i32
        %20 = tpu.memref_slice %arg3[%15, %c0_i32_20] : memref<16x32xf32, #tpu.memory_space<vmem>> -> memref<1x32xf32, #tpu.memory_space<vmem>>
        tpu.enqueue_dma source(%19 : memref<1x32xf32, #tpu.memory_space<any>>) target(%20 : memref<1x32xf32, #tpu.memory_space<vmem>>) target_semaphore(%arg4 : memref<!tpu.dma_semaphore, #tpu.memory_space<semaphore_mem>>)
      } else {
      }
      %c0_i32_14 = arith.constant 0 : i32
      %c0_i32_15 = arith.constant 0 : i32
      %13 = tpu.memref_slice %arg2[%c0_i32_14, %c0_i32_15] : memref<100x32xf32, #tpu.memory_space<any>> -> memref<1x32xf32, #tpu.memory_space<any>>
      %c0_i32_16 = arith.constant 0 : i32
      %c0_i32_17 = arith.constant 0 : i32
      %14 = tpu.memref_slice %arg3[%c0_i32_16, %c0_i32_17] : memref<16x32xf32, #tpu.memory_space<vmem>> -> memref<1x32xf32, #tpu.memory_space<vmem>>
      tpu.wait_dma2 semaphore(%arg4 : memref<!tpu.dma_semaphore, #tpu.memory_space<semaphore_mem>>) src(%13 : memref<1x32xf32, #tpu.memory_space<any>>) dst(%14 : memref<1x32xf32, #tpu.memory_space<vmem>>)
    }
    %c16_i32_5 = arith.constant 16 : i32
    %c0 = arith.constant 0 : index
    %c0_6 = arith.constant 0 : index
    %3 = vector.load %arg3[%c0, %c0_6] : memref<16x32xf32, #tpu.memory_space<vmem>>, vector<16x32xf32>
    %cst = arith.constant 5.65685415 : f32
    %4 = vector.broadcast %cst : f32 to vector<16x32xf32>
    %5 = arith.mulf %3, %4 : vector<16x32xf32>
    %c0_7 = arith.constant 0 : index
    %c0_8 = arith.constant 0 : index
    %6 = vector.load %arg3[%c0_7, %c0_8] : memref<16x32xf32, #tpu.memory_space<vmem>>, vector<16x32xf32>
    tpu.vector_store %arg3[%c0_7, %c0_8], %5 {strides = array<i32>} : memref<16x32xf32, #tpu.memory_space<vmem>>, vector<16x32xf32>,
    return
  }
  func.func @transform_1(%arg0: i32, %arg1: memref<16xi32, #tpu.memory_space<smem>>) -> (i32, i32) {
    %c0_i32 = arith.constant 0 : i32
    %c0_i32_0 = arith.constant 0 : i32
    return %arg0, %c0_i32 : i32, i32
  }
}

</mosaic_0001>

<bundles_post_ra>
// kernel: tpu_custom_call.1
= control target key start
LH: loop header
LB: loop body
LE: loop exit
PB: predicated region body
PF: predicated region fallthrough
CT: control target
= control target key end

     0   :  { %s248_s12 = smov [#allocation4]   ;;  %s279_s0 = inlined_call_operand.vmem [shape: s32[16], index: 0, kind: input, shape index: {}]   ;;  %s280_s1 = inlined_call_operand.vmem [shape: f32[100,32], index: 1, kind: input, shape index: {}]   ;;  %s281_s2 = inlined_call_operand.hbm [shape: f32[16,32], index: 2, kind: output, shape index: {}]  }
   0x1   :  { %s8_s11 = sshll.u32 %s279_s0, 4  ;;  %s9_s11 = int_to_ptr.vmem [resolvable:$true] %s8_s11 }
   0x2   :  { %11 = dma.vmem_to_smem %s9_s11, 16, %s248_s12, [#allocation3] }
   0x3   :  { %234 = dma.done.wait [#allocation3], 16 }
   0x4   :  { %235 = vsyncadd [#allocation3], 4294967280 }
   0x5   :  { %14 = sfence }
   0x6   :  { %15 = vsyncpa [#allocation6], 0  ;;  %s240_s13 = smov 0  }
   0x7 LB: > { %s24_s14 = sld [smem:[#allocation4 + %s242_s13]]  ;;  %s26_s18 = scalar_lea.vmem [#allocation5], %s242_s13  ;;  %s242_s13 = sphi %s240_s13, %s22_s13  }
   0xd   : > { %s25_s17 = scalar_lea.vmem %s280_s1, %s24_s14 }
   0xe   : > { %v41_v0 = vld [vmem:[%s25_s17] sm:$0x1] }
   0xf   : > { %42 = vst [vmem:[%s26_s18] sm:$0x1] %v41_v0 }
  0x10   : > { %60 = vsyncadd [#allocation2], 16  ;;  %s22_s13 = sadd.s32 1, %s242_s13  }
  0x11   : > { %p19_p0 = scmp.ge.s32.totalorder %s22_s13, 16  }
  0x12   :  { %s244_s0 = smov (%p19_p0), 0  }
  0x13   :  { %21 = sbr.rel (!%p19_p0) target bundleno = 7 (0x7), region = 110 }
  0x18 LB: > { %s67_s19 = sadd.s32 16, %s246_s0  ;;  %s246_s0 = sphi %s244_s0, %s66_s0  }
  0x19   : > { %p167_p1 = scmp.ge.s32.totalorder %s67_s19, 16 }
  0x1a   : > { %s73_s20 = sld [smem:[#allocation4 + %s67_s19]] (!%p167_p1)  ;;  %s147_s24 = scalar_lea.vmem (!%p167_p1), [#allocation5], %s246_s0 }
  0x1b   : > { %71 = sbr.rel (%p167_p1) target bundleno = 36 (0x24), region = 49 }
  0x20   : > { %s74_s23 = scalar_lea.vmem %s280_s1, %s73_s20 }
  0x21   : > { %v90_v1 = vld [vmem:[%s74_s23] sm:$0x1] }
  0x22   : > { %168 = vst [vmem:[%s147_s24 + $0x10] sm:$0x1] %v90_v1 }
  0x23   : > { %109 = vsyncadd [#allocation2], 16 }
  0x24 PF: > { %236 = dma.done.wait [#allocation2], 16 }
  0x25   : > { %237 = vsyncadd [#allocation2], 4294967280  ;;  %s66_s0 = sadd.s32 1, %s246_s0  }
  0x26   : > { %p63_p2 = scmp.ge.s32.totalorder %s66_s0, 16  }
  0x27   :  { %vm117_vm0 = vcmask (%p63_p2), 261120   ;;  %s126_s27 = sshll.u32 (%p63_p2), %s281_s2, 4  ;;  %s249_s28 = smov (%p63_p2), [#allocation5]   ;;  %s127_s27 = int_to_ptr.hbm [resolvable:$true] %s126_s27 }
  0x28   :  { %65 = sbr.rel (!%p63_p2) target bundleno = 24 (0x18), region = 121  ;;  %s124_s29 = sshll.u32 (%p63_p2), %s249_s28, 4  ;;  %s125_s29 = int_to_ptr.vmem [resolvable:$true] %s124_s29 }
  0x29   :  { %v113_v2 = vld [vmem:[#allocation5] sm:$0xff] (%p63_p2)  ;;  %v114_v3 = vld [vmem:[#allocation5 + $0x8] sm:$0xff] (%p63_p2)  ;;  %s250_s30 = smov (%p63_p2), 128   ;;  %s251_s3 = smov (%p63_p2), 8  }
  0x2a   :  { %v115_v4 = vmul.f32 (%p63_p2), 5.656854, %v113_v2  ;;  %v116_v5 = vmul.f32 (%p63_p2), 5.656854, %v114_v3 }
  0x2c   :  { %118 = vst.msk [vmem:[#allocation5] sm:$0xff] (%p63_p2), %vm117_vm0, %v115_v4 }
  0x2d   :  { %119 = vst.msk [vmem:[#allocation5 + $0x8] sm:$0xff] %vm117_vm0, %v116_v5 }
  0x2e   :  { %132 = dma.vmem_to_hbm [thread:$0]  %s125_s29, 256, %s127_s27, [#allocation6], %s250_s30, %s250_s30, %s251_s3  }
  0x2f   :  { %238 = dma.done.wait [#allocation6], 256  }
  0x30   :  { %239 = vsyncadd [#allocation6], 4294967040 }
  0x31   :  { %137 = vsyncpa [#allocation6], 1 }
  0x32   :  { %138 = vsyncmov [#allocation2] }
  0x35   :  { %s139_s1 = vpop.sfrf %138 }
  0x36   :  { %p169_p3 = scmp.ne.s32.totalorder %s139_s1, 0 }
  0x38   :  { %143 = shalt.err (%p169_p3)  }

</bundles_post_ra>
